<compile_context>
chip_gen: v7x
topology: tpu7x:2x2x1
jax: 0.10.0
libtpu: 0.0.40
codegen_flags: <defaults>
</compile_context>

<pallas_src>
import functools

import jax
import jax.numpy as jnp
from jax import lax
from jax.experimental import pallas as pl
from jax.experimental.pallas import tpu as pltpu

_LANE = 128


def _round_up(v, m):
    return ((v + m - 1) // m) * m


def _pad2d(a, rows, cols):
    pr, pc = rows - a.shape[0], cols - a.shape[1]
    if pr or pc:
        a = jnp.pad(a, ((0, pr), (0, pc)))
    return a


def _pick_tile(n_pad, pref):
    """Largest multiple of 128 <= pref that divides n_pad (n_pad % 128 == 0)."""
    t = max((min(pref, n_pad) // _LANE) * _LANE, _LANE)
    while n_pad % t:
        t -= _LANE
    return t


@functools.lru_cache(maxsize=None)
def _vmem_limit_bytes():
    """Per-generation scoped VMEM limit (v7x only has 64 MiB physical)."""
    cap = 128 * 1024 * 1024
    try:
        cap = int(getattr(pltpu.get_tpu_info(), "vmem_capacity_bytes", cap))
    except Exception:
        pass
    # Leave headroom for compiler-internal scratch; per-step footprint of the
    # two-pass guard kernel is only a few MiB, so this is never the binding
    # constraint anymore.
    return int(min(max(cap - 16 * 1024 * 1024, 32 * 1024 * 1024),
                   96 * 1024 * 1024))


def _att_flags(x, adj_mask):
    """Two data-dependent branches of att_coef, derived from node 0.

    Reference: `if att_dense[0, 0] == 1:` (remove diagonal) and
               `if att_dense_norm[0, 0] == 0:` (add 1/(deg+1) self loops).
    Both depend only on x[0] and adj[0, 0]; derived structurally instead of
    exact float equality on a computed cosine (fragile in fp32).
    """
    # TODO(synk): the reference compares sklearn float output with `== 1` /
    # `== 0` exactly; we use the mathematically equivalent structural test.
    x0 = x[0].astype(jnp.float32)
    cos00 = jnp.where(jnp.sum(x0 * x0) > 0.0, 1.0, 0.0)   # cos(x0, x0)
    sim00 = jnp.where(adj_mask[0, 0] != 0, cos00, 0.0)    # edge-masked
    sim00 = jnp.where(sim00 < 0.1, 0.0, sim00)            # threshold
    remove_diag = sim00 == 1.0
    add_self = jnp.logical_or(remove_diag, sim00 == 0.0)
    return jnp.stack([remove_diag, add_self]).astype(jnp.int32)


# ---------------------------------------------------------------------------
# prep kernel: per row block, xn = x / ||x||_2 (bf16) and h = x @ W + b (bf16)
# ---------------------------------------------------------------------------
def _prep_kernel(x_ref, w_ref, b_ref, xn_ref, h_ref):
    x = x_ref[...]                                            # [tr, f_in] f32
    nsq = jnp.sum(x * x, axis=1, keepdims=True)
    inv = jnp.where(nsq > 0.0, lax.rsqrt(nsq), 0.0)           # zero rows -> 0
    xn_ref[...] = (x * inv).astype(xn_ref.dtype)
    h = jnp.dot(x.astype(jnp.bfloat16), w_ref[...].astype(jnp.bfloat16),
                preferred_element_type=jnp.float32)
    h_ref[...] = (h + b_ref[...]).astype(h_ref.dtype)         # bf16 store


# ---------------------------------------------------------------------------
# guard kernel: att_coef + GCNConv aggregation, two passes over column blocks
#   grid = (row blocks [parallel], phase [arbitrary], col blocks [arbitrary])
# ---------------------------------------------------------------------------
def _guard_kernel(flags_ref, xn_i_ref, xnt_k_ref, adj_ref, h_ref, *refs,
                  apply_relu, emit_adj):
    if emit_adj:
        xout_ref, adjout_ref, rowsum_ref, deg_ref, acc_ref = refs
    else:
        xout_ref, rowsum_ref, deg_ref, acc_ref = refs
        adjout_ref = None

    i = pl.program_id(0)
    phase = pl.program_id(1)
    k = pl.program_id(2)
    num_k = pl.num_programs(2)
    tm, tk = adj_ref.shape

    remove_diag = flags_ref[0] != 0
    add_self = flags_ref[1] != 0

    # ---- att_coef ingredients for tile (i, k) -- shared by both phases ----
    # cosine similarity: xn rows are already L2-normalized; bf16 operands,
    # f32 MXU accumulation.  RHS (xn^T) was pre-transposed in the wrapper so
    # this is a plain [M,K]@[K,N] matmul, no per-tile XLU transpose.
    sim = jnp.dot(xn_i_ref[...], xnt_k_ref[...],
                  preferred_element_type=jnp.float32)         # [tm, tk]

    row_g = lax.broadcasted_iota(jnp.int32, (tm, tk), 0) + i * tm
    col_g = lax.broadcasted_iota(jnp.int32, (tm, tk), 1) + k * tk
    diag = row_g == col_g

    # single merged mask: edge set, 0.1 threshold, optional diagonal removal
    keep = jnp.logical_and(adj_ref[...] != 0, sim >= 0.1)
    keep = jnp.logical_and(
        keep, jnp.logical_not(jnp.logical_and(remove_diag, diag)))
    sim = jnp.where(keep, sim, 0.0)

    # ---- phase 0: accumulate L1 row sums and nonzero degrees --------------
    @pl.when(jnp.logical_and(phase == 0, k == 0))
    def _init_sums():
        rowsum_ref[...] = jnp.zeros_like(rowsum_ref)
        deg_ref[...] = jnp.zeros_like(deg_ref)

    @pl.when(phase == 0)
    def _accumulate():
        rowsum_ref[...] += jnp.sum(sim, axis=1, keepdims=True)
        deg_ref[...] += jnp.sum(keep.astype(jnp.float32), axis=1,
                                keepdims=True)

    # ---- phase 1: normalize, self-loops, exp, aggregate, emit mask --------
    @pl.when(jnp.logical_and(phase == 1, k == 0))
    def _init_acc():
        acc_ref[...] = jnp.zeros_like(acc_ref)

    @pl.when(phase == 1)
    def _aggregate():
        rs = rowsum_ref[...]                                   # [tm, 1]
        inv = 1.0 / jnp.where(rs > 0.0, rs, 1.0)               # exact; tiny vec
        lam = 1.0 / (deg_ref[...] + 1.0)                       # 1/(deg+1)
        att = sim * inv                                        # L1 normalized
        att = jnp.where(jnp.logical_and(add_self, diag), att + lam, att)
        # exp() only on nonzero (edge / self-loop) entries
        new_adj = jnp.where(att != 0.0, jnp.exp(att), 0.0)
        if emit_adj:
            # the next layer's att_coef only consumes the edge structure, so
            # the adjacency written back to HBM is a compact int8 mask.
            adjout_ref[...] = jnp.where(att != 0.0, 1.0, 0.0).astype(
                adjout_ref.dtype)
        acc_ref[...] += jnp.dot(new_adj.astype(jnp.bfloat16), h_ref[...],
                                preferred_element_type=jnp.float32)

    @pl.when(jnp.logical_and(phase == 1, k == num_k - 1))
    def _finalize():
        out = acc_ref[...]
        if apply_relu:
            out = jnp.maximum(out, 0.0)
        # TODO(synk): GCNConv dropout is identity at inference; not modeled.
        xout_ref[...] = out.astype(xout_ref.dtype)


# ---------------------------------------------------------------------------
# wrappers
# ---------------------------------------------------------------------------
def gcnguard_layer(x, adj_mask, w, b, flags, *, apply_relu, emit_adj):
    """One fused att_coef + GCNConv layer on 128-padded inputs."""
    n_pad, f_in = x.shape
    f_out = w.shape[1]
    vmem_limit = _vmem_limit_bytes()

    # ---- prep pass: xn (bf16) and h = x @ W + b (bf16) --------------------
    t_rows = _pick_tile(n_pad, 512)          # mem-bound: big row tiles
    xn, h = pl.pallas_call(
        _prep_kernel,
        grid=(n_pad // t_rows,),
        in_specs=[
            pl.BlockSpec((t_rows, f_in), lambda i: (i, 0)),
            pl.BlockSpec((f_in, f_out), lambda i: (0, 0)),
            pl.BlockSpec((1, f_out), lambda i: (0, 0)),
        ],
        out_specs=(
            pl.BlockSpec((t_rows, f_in), lambda i: (i, 0)),
            pl.BlockSpec((t_rows, f_out), lambda i: (i, 0)),
        ),
        out_shape=(
            jax.ShapeDtypeStruct((n_pad, f_in), jnp.bfloat16),
            jax.ShapeDtypeStruct((n_pad, f_out), jnp.bfloat16),
        ),
        compiler_params=pltpu.CompilerParams(
            dimension_semantics=("parallel",),
            vmem_limit_bytes=vmem_limit),
    )(x, w, b)

    # Pre-transposed xn for the sim-matmul RHS (moves any transpose out of
    # the guard inner loop; a single cheap XLA transpose per layer).
    xnt = jnp.transpose(xn)                                   # [f_in, n_pad]

    # ---- guarded attention + aggregation pass ------------------------------
    # Row block: <= 512, and at least two row blocks when possible so the
    # 'parallel' axis can shard across v7x's two TensorCores.
    tm = _pick_tile(n_pad, min(512, max(_LANE, n_pad // 2)))
    tk = _pick_tile(n_pad, 512)
    num_i, num_k = n_pad // tm, n_pad // tk

    kernel = functools.partial(_guard_kernel, apply_relu=apply_relu,
                               emit_adj=emit_adj)

    out_specs = [pl.BlockSpec((tm, f_out), lambda i, p, k, f: (i, 0))]
    out_shape = [jax.ShapeDtypeStruct((n_pad, f_out), jnp.float32)]
    if emit_adj:
        # index (i, p*k): parked at (i, 0) during phase 0 (never flushed while
        # unwritten), swept over k during phase 1 -> each tile written once.
        out_specs.append(pl.BlockSpec((tm, tk), lambda i, p, k, f: (i, p * k)))
        out_shape.append(jax.ShapeDtypeStruct((n_pad, n_pad), jnp.int8))

    grid_spec = pltpu.PrefetchScalarGridSpec(
        num_scalar_prefetch=1,          # flags [remove_diag, add_self] in SMEM
        grid=(num_i, 2, num_k),
        in_specs=[
            pl.BlockSpec((tm, f_in), lambda i, p, k, f: (i, 0)),      # xn rows
            pl.BlockSpec((f_in, tk), lambda i, p, k, f: (0, k)),      # xn^T cols
            pl.BlockSpec((tm, tk), lambda i, p, k, f: (i, k)),        # adj mask
            pl.BlockSpec((tk, f_out), lambda i, p, k, f: (p * k, 0)),  # h blk
        ],
        out_specs=tuple(out_specs),
        scratch_shapes=[
            pltpu.VMEM((tm, 1), jnp.float32),        # L1 row sums
            pltpu.VMEM((tm, 1), jnp.float32),        # nonzero degrees
            pltpu.VMEM((tm, f_out), jnp.float32),    # aggregation accumulator
        ],
    )

    cost = pl.CostEstimate(
        flops=int(2 * n_pad * n_pad * (2 * f_in + f_out)),
        transcendentals=int(n_pad * n_pad),
        bytes_accessed=int(3 * n_pad * n_pad                       # adj in/out
                           + 4 * n_pad * f_in * num_i              # xn / xn^T
                           + 2 * n_pad * f_out * num_i             # h
                           + 4 * n_pad * f_out))                   # xout

    results = pl.pallas_call(
        kernel,
        grid_spec=grid_spec,
        out_shape=tuple(out_shape),
        compiler_params=pltpu.CompilerParams(
            dimension_semantics=("parallel", "arbitrary", "arbitrary"),
            vmem_limit_bytes=vmem_limit),
        cost_estimate=cost,
    )(flags, xn, xnt, adj_mask, h)

    if emit_adj:
        return results[0], results[1]
    return results[0], None


def gcnguard_forward(x, adj, params):
    """GCNGuard.forward: per layer adj = att_coef(x, adj); x = GCNConv(x, adj)."""
    n = x.shape[0]
    f_final = params[-1][0].shape[1]
    n_pad = _round_up(n, _LANE)

    x_p = _pad2d(x.astype(jnp.float32), n_pad, _round_up(x.shape[1], _LANE))
    # att_coef only uses the adjacency's edge structure -> carry an int8 mask.
    adj_p = _pad2d((adj != 0).astype(jnp.int8), n_pad, n_pad)

    n_layers = len(params)
    for li, (w, b) in enumerate(params):
        last = li == n_layers - 1
        f_in, f_out = w.shape
        w_p = _pad2d(w.astype(jnp.float32),
                     _round_up(f_in, _LANE), _round_up(f_out, _LANE))
        b_p = _pad2d(jnp.asarray(b, jnp.float32).reshape(1, -1),
                     1, _round_up(f_out, _LANE))
        flags = _att_flags(x_p, adj_p)
        x_p, adj_new = gcnguard_layer(
            x_p, adj_p, w_p, b_p, flags,
            apply_relu=not last,       # activation on all but the last layer
            emit_adj=not last)         # last layer's adjacency is never used
        if adj_new is not None:
            adj_p = adj_new
    return x_p[:n, :f_final]


if __name__ == "__main__":
    # Small synthetic problem: N=64 nodes, in=16 -> hidden=32 -> out=8, 2 layers
    N, IN_F, HID_F, OUT_F = 64, 16, 32, 8

    key = jax.random.PRNGKey(0)
    kx, ka, kw1, kb1, kw2, kb2 = jax.random.split(key, 6)

    x = jax.random.normal(kx, (N, IN_F), dtype=jnp.float32)

    # random sparse-ish adjacency (no self-loops), dense float32 representation
    adj = jax.random.bernoulli(ka, p=0.15, shape=(N, N)).astype(jnp.float32)
    adj = adj * (1.0 - jnp.eye(N, dtype=jnp.float32))

    # parameters (W stored as [in, out]; torch Linear would be [out, in])
    w1 = jax.random.normal(kw1, (IN_F, HID_F), dtype=jnp.float32) * 0.1
    b1 = jax.random.normal(kb1, (1, HID_F), dtype=jnp.float32) * 0.01
    w2 = jax.random.normal(kw2, (HID_F, OUT_F), dtype=jnp.float32) * 0.1
    b2 = jax.random.normal(kb2, (1, OUT_F), dtype=jnp.float32) * 0.01
    params = [(w1, b1), (w2, b2)]

    out = gcnguard_forward(x, adj, params)
    out = jax.block_until_ready(out)
    assert out.shape == (N, OUT_F)
    assert bool(jnp.all(jnp.isfinite(out)))
    print("KERNEL_OK")
</pallas_src>

<mosaic_0001>
module attributes {stable_mosaic.version = 11 : i64} {
  func.func @_prep_kernel(%arg0: i32, %arg1: memref<128x128xf32, #tpu.memory_space<vmem>>, %arg2: memref<128x128xf32, #tpu.memory_space<vmem>>, %arg3: memref<1x128xf32, #tpu.memory_space<vmem>>, %arg4: memref<128x128xbf16, #tpu.memory_space<vmem>>, %arg5: memref<128x128xbf16, #tpu.memory_space<vmem>>) attributes {dimension_semantics = [#tpu.dimension_semantics<parallel>], iteration_bounds = array<i64: 1>, scalar_prefetch = 0 : i64, scratch_operands = 0 : i64, tpu.core_type = #tpu.core_type<tc>, window_params = [{transform_indices = @transform_0, window_bounds = array<i64: 128, 128>}, {pipeline_mode = #tpu.pipeline_mode<synchronous>, transform_indices = @transform_1, window_bounds = array<i64: 128, 128>}, {pipeline_mode = #tpu.pipeline_mode<synchronous>, transform_indices = @transform_2, window_bounds = array<i64: 1, 128>}, {transform_indices = @transform_3, window_bounds = array<i64: 128, 128>}, {transform_indices = @transform_4, window_bounds = array<i64: 128, 128>}]} {
    %c0 = arith.constant 0 : index
    %c0_0 = arith.constant 0 : index
    %0 = vector.load %arg1[%c0, %c0_0] : memref<128x128xf32, #tpu.memory_space<vmem>>, vector<128x128xf32>
    %1 = arith.mulf %0, %0 : vector<128x128xf32>
    %cst = arith.constant dense<0.000000e+00> : vector<128xf32>
    %2 = vector.multi_reduction <add>, %1, %cst [1] : vector<128x128xf32> to vector<128xf32>
    %3 = vector.shape_cast %2 : vector<128xf32> to vector<128x1xf32>
    %cst_1 = arith.constant 0.000000e+00 : f32
    %4 = vector.broadcast %cst_1 : f32 to vector<128x1xf32>
    %5 = arith.cmpf ogt, %3, %4 : vector<128x1xf32>
    %6 = math.rsqrt %3 : vector<128x1xf32>
    %cst_2 = arith.constant 0.000000e+00 : f32
    %7 = vector.broadcast %cst_2 : f32 to vector<128x1xf32>
    %8 = arith.select %5, %6, %7 : vector<128x1xi1>, vector<128x1xf32>
    %9 = vector.broadcast %8 : vector<128x1xf32> to vector<128x128xf32>
    %10 = arith.mulf %0, %9 : vector<128x128xf32>
    %11 = arith.truncf %10 : vector<128x128xf32> to vector<128x128xbf16>
    %c0_3 = arith.constant 0 : index
    %c0_4 = arith.constant 0 : index
    %12 = vector.load %arg4[%c0_3, %c0_4] : memref<128x128xbf16, #tpu.memory_space<vmem>>, vector<128x128xbf16>
    tpu.vector_store %arg4[%c0_3, %c0_4], %11 {strides = array<i32>} : memref<128x128xbf16, #tpu.memory_space<vmem>>, vector<128x128xbf16>,
    %13 = arith.truncf %0 : vector<128x128xf32> to vector<128x128xbf16>
    %c0_5 = arith.constant 0 : index
    %c0_6 = arith.constant 0 : index
    %14 = vector.load %arg2[%c0_5, %c0_6] : memref<128x128xf32, #tpu.memory_space<vmem>>, vector<128x128xf32>
    %15 = arith.truncf %14 : vector<128x128xf32> to vector<128x128xbf16>
    %cst_7 = arith.constant dense<0.000000e+00> : vector<128x128xf32>
    %16 = tpu.matmul %13, %15, %cst_7 {dimension_numbers = #tpu.dot_dimension_numbers<[1], [0], [0], [1], [0, 0, 1, 1], [], []>} : vector<128x128xbf16>, vector<128x128xbf16>, vector<128x128xf32> -> vector<128x128xf32>
    %c0_8 = arith.constant 0 : index
    %c0_9 = arith.constant 0 : index
    %17 = vector.load %arg3[%c0_8, %c0_9] : memref<1x128xf32, #tpu.memory_space<vmem>>, vector<1x128xf32>
    %18 = vector.broadcast %17 : vector<1x128xf32> to vector<128x128xf32>
    %19 = arith.addf %16, %18 : vector<128x128xf32>
    %20 = arith.truncf %19 : vector<128x128xf32> to vector<128x128xbf16>
    %c0_10 = arith.constant 0 : index
    %c0_11 = arith.constant 0 : index
    %21 = vector.load %arg5[%c0_10, %c0_11] : memref<128x128xbf16, #tpu.memory_space<vmem>>, vector<128x128xbf16>
    tpu.vector_store %arg5[%c0_10, %c0_11], %20 {strides = array<i32>} : memref<128x128xbf16, #tpu.memory_space<vmem>>, vector<128x128xbf16>,
    return
  }
  func.func @transform_0(%arg0: i32) -> (i32, i32) {
    %c0_i32 = arith.constant 0 : i32
    %c0_i32_0 = arith.constant 0 : i32
    return %arg0, %c0_i32 : i32, i32
  }
  func.func @transform_1(%arg0: i32) -> (i32, i32) {
    %c0_i32 = arith.constant 0 : i32
    %c0_i32_0 = arith.constant 0 : i32
    %c0_i32_1 = arith.constant 0 : i32
    return %c0_i32, %c0_i32_0 : i32, i32
  }
  func.func @transform_2(%arg0: i32) -> (i32, i32) {
    %c0_i32 = arith.constant 0 : i32
    %c0_i32_0 = arith.constant 0 : i32
    %c0_i32_1 = arith.constant 0 : i32
    return %c0_i32, %c0_i32_0 : i32, i32
  }
  func.func @transform_3(%arg0: i32) -> (i32, i32) {
    %c0_i32 = arith.constant 0 : i32
    %c0_i32_0 = arith.constant 0 : i32
    return %arg0, %c0_i32 : i32, i32
  }
  func.func @transform_4(%arg0: i32) -> (i32, i32) {
    %c0_i32 = arith.constant 0 : i32
    %c0_i32_0 = arith.constant 0 : i32
    return %arg0, %c0_i32 : i32, i32
  }
}

</mosaic_0001>

<bundles_post_ra>
// kernel: tpu_custom_call.1
= control target key start
LH: loop header
LB: loop body
LE: loop exit
PB: predicated region body
PF: predicated region fallthrough
CT: control target
= control target key end

     0   :  { %10 = vsyncpa [#allocation3], 0  ;;  %s1101_s0 = inlined_call_operand.hbm [shape: f32[128,128], index: 0, kind: input, shape index: {}]   ;;  %s1102_s1 = inlined_call_operand.hbm [shape: f32[128,128], index: 1, kind: input, shape index: {}]   ;;  %s1103_s2 = inlined_call_operand.hbm [shape: f32[1,128], index: 2, kind: input, shape index: {}]   ;;  %s1104_s3 = inlined_call_operand.hbm [shape: bf16[128,128], index: 3, kind: output, shape index: {0}]   ;;  %s1105_s4 = inlined_call_operand.hbm [shape: bf16[128,128], index: 4, kind: output, shape index: {1}]  }
   0x1   :  { %11 = vsyncpa [#allocation6], 0 }
   0x2   :  { %12 = vsyncpa [#allocation4], 0 }
   0x3   :  { %13 = vsyncpa [#allocation10], 0  ;;  %s898_s15 = smov [#allocation5]   ;;  %s899_s17 = smov [#allocation2]  }
   0x4   :  { %s31_s16 = sshll.u32 %s898_s15, 4  ;;  %s19_s18 = sshll.u32 %s899_s17, 4  ;;  %s32_s16 = int_to_ptr.vmem [resolvable:$true] %s31_s16  ;;  %s932_s18 = int_to_ptr.vmem [resolvable:$true] %s19_s18 }
   0x5   :  { %s780_s21 = scalar_lea.hbm %s1102_s1, 2048 }
   0x6   :  { %p781_p0 = scmp.ne.s32.totalorder %s1102_s1, %s780_s21  ;;  %p784_p1 = scmp.lt.u32.totalorder %s780_s21, %s1102_s1 }
   0x8   :  { %p786_p2 = pnand %p784_p1, %p781_p0 }
   0xa   :  { %789 = shalt.err (!%p786_p2)
}
   0xb   :  { %s790_s26 = scalar_lea.vmem %s32_s16, 2048  ;;  %p795_p4 = scmp.lt.s32.totalorder %s32_s16, %s32_s16 }
   0xc   :  { %p791_p3 = scmp.ne.s32.totalorder %s32_s16, %s790_s26  ;;  %p796_p5 = scmp.lt.s32.totalorder %s790_s26, %s790_s26 }
   0xe   :  { %p797_p6 = por %p796_p5, %p795_p4 }
  0x10   :  { %p798_p7 = pnand %p797_p6, %p791_p3 }
  0x12   :  { %801 = shalt.err (!%p798_p7)
}
  0x13   :  { %s900_s27 = smov 128   ;;  %s901_s28 = smov 8  }
  0x14   :  { %37 = dma.hbm_to_vmem [thread:$0]  %s1102_s1, 2048, %s32_s16, [#allocation6], %s900_s27, %s900_s27, %s901_s28  }
  0x15   :  { %s802_s7 = scalar_lea.hbm %s1101_s0, 2048 }
  0x16   :  { %p803_p8 = scmp.ne.s32.totalorder %s1101_s0, %s802_s7  ;;  %p806_p9 = scmp.lt.u32.totalorder %s802_s7, %s1101_s0 }
  0x18   :  { %p808_p10 = pnand %p806_p9, %p803_p8 }
  0x1a   :  { %811 = shalt.err (!%p808_p10)
}
  0x1b   :  { %s812_s12 = scalar_lea.vmem %s932_s18, 2048  ;;  %p817_p12 = scmp.lt.s32.totalorder %s932_s18, %s932_s18 }
  0x1c   :  { %p813_p11 = scmp.ne.s32.totalorder %s932_s18, %s812_s12  ;;  %p818_p13 = scmp.lt.s32.totalorder %s812_s12, %s812_s12 }
  0x1e   :  { %p819_p0 = por %p818_p13, %p817_p12 }
  0x20   :  { %p820_p1 = pnand %p819_p0, %p813_p11 }
  0x22   :  { %823 = shalt.err (!%p820_p1)
}
  0x23   :  { %25 = dma.hbm_to_vmem [thread:$0]  %s1101_s0, 2048, %s932_s18, [#allocation3], %s900_s27, %s900_s27, %s901_s28  }
  0x24   :  { %s902_s14 = smov [#allocation7]   ;;  %s824_s19 = scalar_lea.hbm %s1103_s2, 16 }
  0x25   :  { %s44_s15 = sshll.u32 %s902_s14, 4  ;;  %p825_p2 = scmp.ne.s32.totalorder %s1103_s2, %s824_s19  ;;  %s45_s15 = int_to_ptr.vmem [resolvable:$true] %s44_s15 }
  0x26   :  { %p828_p3 = scmp.lt.u32.totalorder %s824_s19, %s1103_s2 }
  0x28   :  { %p830_p4 = pnand %p828_p3, %p825_p2 }
  0x2a   :  { %833 = shalt.err (!%p830_p4)
}
  0x2b   :  { %s834_s24 = scalar_lea.vmem %s45_s15, 16  ;;  %s838_s0 = scalar_lea.vmem %s45_s15, 32 }
  0x2c   :  { %p835_p5 = scmp.ne.s32.totalorder %s45_s15, %s834_s24  ;;  %p839_p6 = scmp.lt.s32.totalorder %s45_s15, %s45_s15 }
  0x2d   :  { %p840_p7 = scmp.lt.s32.totalorder %s838_s0, %s834_s24 }
  0x2f   :  { %p841_p8 = por %p840_p7, %p839_p6 }
  0x31   :  { %p842_p9 = pnand %p841_p8, %p835_p5 }
  0x33   :  { %845 = shalt.err (!%p842_p9)
}
  0x34   :  { %47 = dma.hbm_to_vmem [thread:$0]  %s1103_s2, 16, %s45_s15, [#allocation6]  }
  0x35   :  { %890 = dma.done.wait [#allocation3], 2048  }
  0x36   :  { %891 = vsyncadd [#allocation3], 4294965248 }
  0x37   :  { %892 = dma.done.wait [#allocation6], 2064  }
  0x38   :  { %893 = vsyncadd [#allocation6], 4294965232  ;;  %v274_v0 = vld [vmem:[#allocation5] sm:$0xff]  ;;  %v275_v1 = vld [vmem:[#allocation5 + $0x8] sm:$0xff]  ;;  %s903_s2 = smov [#allocation8]  }
  0x39   :  { %v276_v2 = vld [vmem:[#allocation5 + $0x10] sm:$0xff]  ;;  %v290_v3 = vpack.c.bf16 %v275_v1, %v274_v0  ;;  %v277_v4 = vld [vmem:[#allocation5 + $0x18] sm:$0xff]  ;;  %v278_v6 = vld [vmem:[#allocation5 + $0x20] sm:$0xff]  ;;  %s487_s26 = sshll.u32 %s903_s2, 4  ;;  %s488_s26 = int_to_ptr.vmem [resolvable:$true] %s487_s26 }
  0x3a   :  { %v291_v5 = vpack.c.bf16 %v277_v4, %v276_v2  ;;  %v279_v7 = vld [vmem:[#allocation5 + $0x28] sm:$0xff]  ;;  %v280_v8 = vld [vmem:[#allocation5 + $0x30] sm:$0xff]  ;;  %v281_v10 = vld [vmem:[#allocation5 + $0x38] sm:$0xff]  ;;  %s846_s27 = scalar_lea.vmem %s488_s26, 1024  ;;  %p851_p11 = scmp.lt.s32.totalorder %s488_s26, %s488_s26 }
  0x3b   :  { %691 = vmatprep.subr.bf16.mxu0 %v290_v3  ;;  %723 = vmatprep.subr.bf16.mxu1 %v290_v3  ;;  %v292_v9 = vpack.c.bf16 %v279_v7, %v278_v6  ;;  %v975_v11 = vld [vmem:[#allocation2] sm:$0xff]  ;;  %v977_v12 = vld [vmem:[#allocation2 + $0x8] sm:$0xff]  ;;  %v985_v16 = vld [vmem:[#allocation2 + $0x10] sm:$0xff]  ;;  %v293_v20 = vpack.c.bf16 %v281_v10, %v280_v8  ;;  %p847_p10 = scmp.ne.s32.totalorder %s488_s26, %s846_s27  ;;  %p852_p12 = scmp.lt.s32.totalorder %s846_s27, %s846_s27 }
  0x3c   :  { %692 = vmatpush3.bf16.msra.mxu0 %v290_v3  ;;  %731 = vmatpush3.bf16.msra.mxu1 %v290_v3  ;;  %v266_v13 = vpack.c.bf16 %v977_v12, %v975_v11  ;;  %v981_v14 = vld [vmem:[#allocation2 + $0x40] sm:$0xff]  ;;  %v983_v15 = vld [vmem:[#allocation2 + $0x48] sm:$0xff]  ;;  %v76_v18 = vmul.f32 %v985_v16, %v985_v16  ;;  %v74_v19 = vmul.f32 %v975_v11, %v975_v11  ;;  %v993_v23 = vld [vmem:[#allocation2 + $0x18] sm:$0xff] }
  0x3d   :  { %693 = vmatprep.subr.bf16.mxu0 %v291_v5  ;;  %724 = vmatprep.subr.bf16.mxu1 %v291_v5  ;;  %v270_v17 = vpack.c.bf16 %v983_v15, %v981_v14  ;;  %v282_v21 = vld [vmem:[#allocation5 + $0x40] sm:$0xff]  ;;  %v283_v22 = vld [vmem:[#allocation5 + $0x48] sm:$0xff]  ;;  %v77_v24 = vmul.f32 %v993_v23, %v993_v23  ;;  %v75_v25 = vmul.f32 %v977_v12, %v977_v12  ;;  %v284_v27 = vld [vmem:[#allocation5 + $0x50] sm:$0xff]  ;;  %p853_p13 = por %p852_p12, %p851_p11 }
  0x3e   :  { %707 = vmatprep.mubr.bf16.mxu0 %v266_v13  ;;  %94 = vadd.xlane.f32.xlu1 %v76_v18  ;;  %v294_v26 = vpack.c.bf16 %v283_v22, %v282_v21  ;;  %v285_v28 = vld [vmem:[#allocation5 + $0x58] sm:$0xff]  ;;  %v999_v29 = vld [vmem:[#allocation2 + $0x20] sm:$0xff]  ;;  %v1001_v30 = vld [vmem:[#allocation2 + $0x28] sm:$0xff]  ;;  %v83_v43 = vmul.f32 %v983_v15, %v983_v15  ;;  %v82_v44 = vmul.f32 %v981_v14, %v981_v14 }
  0x3f   :  { %715 = vmatprep.mubr.bf16.mxu1 %v270_v17  ;;  %90 = vadd.xlane.f32.xlu0 %v74_v19  ;;  %v79_v31 = vmul.f32 %v1001_v30, %v1001_v30  ;;  %v78_v32 = vmul.f32 %v999_v29, %v999_v29  ;;  %v295_v33 = vpack.c.bf16 %v285_v28, %v284_v27  ;;  %v286_v34 = vld [vmem:[#allocation5 + $0x60] sm:$0xff]  ;;  %v287_v35 = vld [vmem:[#allocation5 + $0x68] sm:$0xff]  ;;  %v1007_v36 = vld [vmem:[#allocation2 + $0x30] sm:$0xff]  ;;  %p854_p0 = pnand %p853_p13, %p847_p10 }
  0x40   :  { %694 = vmatpush3.bf16.msra.mxu0 %v291_v5  ;;  %732 = vmatpush3.bf16.msra.mxu1 %v291_v5  ;;  %v1009_v37 = vld [vmem:[#allocation2 + $0x38] sm:$0xff]  ;;  %v80_v39 = vmul.f32 %v1007_v36, %v1007_v36  ;;  %v296_v40 = vpack.c.bf16 %v287_v35, %v286_v34  ;;  %v288_v41 = vld [vmem:[#allocation5 + $0x70] sm:$0xff]  ;;  %v1027_v50 = vld [vmem:[#allocation2 + $0x60] sm:$0xff]  ;;  %v267_v52 = vpack.c.bf16 %v993_v23, %v985_v16 }
  0x41   :  { %695 = vmatprep.subr.bf16.mxu0 %v292_v9  ;;  %725 = vmatprep.subr.bf16.mxu1 %v292_v9  ;;  %v81_v38 = vmul.f32 %v1009_v37, %v1009_v37  ;;  %v289_v42 = vld [vmem:[#allocation5 + $0x78] sm:$0xff]  ;;  %v1019_v46 = vld [vmem:[#allocation2 + $0x50] sm:$0xff]  ;;  %v1029_v51 = vld [vmem:[#allocation2 + $0x68] sm:$0xff]  ;;  %v268_v54 = vpack.c.bf16 %v1001_v30, %v999_v29  ;;  %v86_v57 = vmul.f32 %v1027_v50, %v1027_v50 }
  0x42   :  { %96 = vadd.xlane.f32.xlu1 %v77_v24  ;;  %v297_v45 = vpack.c.bf16 %v289_v42, %v288_v41  ;;  %v1021_v47 = vld [vmem:[#allocation2 + $0x58] sm:$0xff]  ;;  %v84_v49 = vmul.f32 %v1019_v46, %v1019_v46  ;;  %v272_v55 = vpack.c.bf16 %v1029_v51, %v1027_v50  ;;  %v87_v56 = vmul.f32 %v1029_v51, %v1029_v51  ;;  %v1043_v58 = vld [vmem:[#allocation2 + $0x70] sm:$0xff] }
  0x43   :  { %92 = vadd.xlane.f32.xlu0 %v75_v25  ;;  %v85_v48 = vmul.f32 %v1021_v47, %v1021_v47  ;;  %v271_v53 = vpack.c.bf16 %v1021_v47, %v1019_v46  ;;  %v1045_v59 = vld [vmem:[#allocation2 + $0x78] sm:$0xff]  ;;  %v88_v61 = vmul.f32 %v1043_v58, %v1043_v58  ;;  %v269_v62 = vpack.c.bf16 %v1009_v37, %v1007_v36 }
  0x44   :  { %696 = vmatpush3.bf16.msra.mxu0 %v292_v9  ;;  %733 = vmatpush3.bf16.msra.mxu1 %v292_v9  ;;  %v89_v60 = vmul.f32 %v1045_v59, %v1045_v59  ;;  %v273_v63 = vpack.c.bf16 %v1045_v59, %v1043_v58 }
  0x45   :  { %697 = vmatprep.subr.bf16.mxu0 %v293_v20  ;;  %726 = vmatprep.subr.bf16.mxu1 %v293_v20 }
  0x46   :  { %100 = vadd.xlane.f32.xlu1 %v79_v31 }
  0x47   :  { %98 = vadd.xlane.f32.xlu0 %v78_v32 }
  0x48   :  { %698 = vmatpush3.bf16.msra.mxu0 %v293_v20  ;;  %734 = vmatpush3.bf16.msra.mxu1 %v293_v20 }
  0x49   :  { %699 = vmatprep.subr.bf16.mxu0 %v294_v26  ;;  %727 = vmatprep.subr.bf16.mxu1 %v294_v26 }
  0x4a   :  { %104 = vadd.xlane.f32.xlu1 %v81_v38 }
  0x4b   :  { %102 = vadd.xlane.f32.xlu0 %v80_v39 }
  0x4c   :  { %700 = vmatpush3.bf16.msra.mxu0 %v294_v26  ;;  %735 = vmatpush3.bf16.msra.mxu1 %v294_v26 }
  0x4d   :  { %701 = vmatprep.subr.bf16.mxu0 %v295_v33  ;;  %728 = vmatprep.subr.bf16.mxu1 %v295_v33 }
  0x4e   :  { %108 = vadd.xlane.f32.xlu1 %v83_v43 }
  0x4f   :  { %106 = vadd.xlane.f32.xlu0 %v82_v44 }
  0x50   :  { %702 = vmatpush3.bf16.msra.mxu0 %v295_v33  ;;  %736 = vmatpush3.bf16.msra.mxu1 %v295_v33 }
  0x51   :  { %703 = vmatprep.subr.bf16.mxu0 %v296_v40  ;;  %729 = vmatprep.subr.bf16.mxu1 %v296_v40 }
  0x52   :  { %112 = vadd.xlane.f32.xlu1 %v85_v48 }
  0x53   :  { %110 = vadd.xlane.f32.xlu0 %v84_v49 }
  0x54   :  { %704 = vmatpush3.bf16.msra.mxu0 %v296_v40  ;;  %737 = vmatpush3.bf16.msra.mxu1 %v296_v40 }
  0x55   :  { %705 = vmatprep.subr.bf16.mxu0 %v297_v45  ;;  %730 = vmatprep.subr.bf16.mxu1 %v297_v45 }
  0x56   :  { %116 = vadd.xlane.f32.xlu1 %v87_v56 }
  0x57   :  { %114 = vadd.xlane.f32.xlu0 %v86_v57 }
  0x58   :  { %706 = vmatpush3.bf16.msra.mxu0 %v297_v45  ;;  %738 = vmatpush3.bf16.msra.mxu1 %v297_v45 }
  0x5a   :  { %120 = vadd.xlane.f32.xlu1 %v89_v60 }
  0x5b   :  { %708 = vmatmul.mubr.bf16.vlgmr.msra.gmra.mrb[0].mxu0 %v267_v52  ;;  %716 = vmatmul.mubr.bf16.vlgmr.msra.gmra.mrb[0].mxu1 %v271_v53 }
  0x5c   :  { %711 = vmatprep.mubr.bf16.mxu0 %v268_v54  ;;  %719 = vmatprep.mubr.bf16.mxu1 %v272_v55 }
  0x5d   :  { %118 = vadd.xlane.f32.xlu0 %v88_v61 }
  0x63   :  { %712 = vmatmul.mubr.bf16.gmra.mrb[4].mxu0 %v269_v62  ;;  %720 = vmatmul.mubr.bf16.gmra.mrb[4].mxu1 %v273_v63 }
  0xcb   :  { %v95_v0 = vpop.xlane.xlu1 %94 }
  0xcc   :  { %v91_v1 = vpop.xlane.xlu0 %90  ;;  %748 = vrsqrt.f32 %v95_v0  ;;  %vm124_vm0 = vcmp.gt.f32.partialorder %v95_v0, 0.0 }
  0xcd   :  { %750 = vrsqrt.f32 %v91_v1  ;;  %vm122_vm1 = vcmp.gt.f32.partialorder %v91_v1, 0.0 }
  0xcf   :  { %v97_v2 = vpop.xlane.xlu1 %96 }
  0xd0   :  { %v93_v3 = vpop.xlane.xlu0 %92  ;;  %752 = vrsqrt.f32 %v97_v2  ;;  %vm125_vm2 = vcmp.gt.f32.partialorder %v97_v2, 0.0 }
  0xd1   :  { %754 = vrsqrt.f32 %v93_v3  ;;  %vm123_vm3 = vcmp.gt.f32.partialorder %v93_v3, 0.0 }
  0xd3   :  { %v101_v4 = vpop.xlane.xlu1 %100 }
  0xd4   :  { %v99_v5 = vpop.xlane.xlu0 %98  ;;  %756 = vrsqrt.f32 %v101_v4  ;;  %vm127_vm4 = vcmp.gt.f32.partialorder %v101_v4, 0.0 }
  0xd5   :  { %758 = vrsqrt.f32 %v99_v5  ;;  %vm126_vm5 = vcmp.gt.f32.partialorder %v99_v5, 0.0 }
  0xd6   :  { %v749_v6 = vpop.eup %748 }
  0xd7   :  { %v751_v7 = vpop.eup %750  ;;  %v156_v8 = vsel %vm124_vm0, %v749_v6, 0.0  ;;  %v105_v9 = vpop.xlane.xlu1 %104 }
  0xd8   :  { %v103_v10 = vpop.xlane.xlu0 %102  ;;  %v154_v13 = vsel %vm122_vm1, %v751_v7, 0.0  ;;  %760 = vrsqrt.f32 %v105_v9  ;;  %v172_v18 = vmul.f32 %v156_v8, %v985_v16  ;;  %vm129_vm6 = vcmp.gt.f32.partialorder %v105_v9, 0.0 }
  0xd9   :  { %762 = vrsqrt.f32 %v103_v10  ;;  %v170_v20 = vmul.f32 %v154_v13, %v975_v11  ;;  %vm128_vm7 = vcmp.gt.f32.partialorder %v103_v10, 0.0 }
  0xda   :  { %v753_v17 = vpop.eup %752 }
  0xdb   :  { %v755_v19 = vpop.eup %754  ;;  %v157_v21 = vsel %vm125_vm2, %v753_v17, 0.0  ;;  %v109_v22 = vpop.xlane.xlu1 %108 }
  0xdc   :  { %v107_v24 = vpop.xlane.xlu0 %106  ;;  %v173_v25 = vmul.f32 %v157_v21, %v993_v23  ;;  %v155_v26 = vsel %vm123_vm3, %v755_v19, 0.0  ;;  %764 = vrsqrt.f32 %v109_v22  ;;  %vm131_vm8 = vcmp.gt.f32.partialorder %v109_v22, 0.0 }
  0xdd   :  { %v171_v27 = vmul.f32 %v155_v26, %v977_v12  ;;  %766 = vrsqrt.f32 %v107_v24  ;;  %vm130_vm9 = vcmp.gt.f32.partialorder %v107_v24, 0.0 }
  0xde   :  { %v757_v28 = vpop.eup %756  ;;  %v589_v31 = vpack.c.bf16 %v173_v25, %v172_v18 }
  0xdf   :  { %v759_v32 = vpop.eup %758  ;;  %v584_v33 = vpack.c.bf16 %v171_v27, %v170_v20  ;;  %v159_v16 = vsel %vm127_vm4, %v757_v28, 0.0  ;;  %v113_v34 = vpop.xlane.xlu1 %112 }
  0xe0   :  { %v111_v35 = vpop.xlane.xlu0 %110  ;;  %661 = vst [vmem:[#allocation8 + $0x8] sm:$0xff] %v589_v31   ;;  %v175_v11 = vmul.f32 %v159_v16, %v1001_v30  ;;  %v158_v38 = vsel %vm126_vm5, %v759_v32, 0.0  ;;  %768 = vrsqrt.f32 %v113_v34  ;;  %vm133_vm10 = vcmp.gt.f32.partialorder %v113_v34, 0.0 }
  0xe1   :  { %585 = vst [vmem:[#allocation8] sm:$0xff] %v584_v33   ;;  %v174_v23 = vmul.f32 %v158_v38, %v999_v29  ;;  %770 = vrsqrt.f32 %v111_v35  ;;  %vm132_vm11 = vcmp.gt.f32.partialorder %v111_v35, 0.0 }
  0xe2   :  { %v761_v12 = vpop.eup %760 }
  0xe3   :  { %v763_v39 = vpop.eup %762  ;;  %v594_v40 = vpack.c.bf16 %v175_v11, %v174_v23  ;;  %v161_v41 = vsel %vm129_vm6, %v761_v12, 0.0  ;;  %v117_v30 = vpop.xlane.xlu1 %116 }
  0xe4   :  { %v177_v42 = vmul.f32 %v161_v41, %v1009_v37  ;;  %v160_v43 = vsel %vm128_vm7, %v763_v39, 0.0  ;;  %v115_v45 = vpop.xlane.xlu0 %114  ;;  %772 = vrsqrt.f32 %v117_v30  ;;  %vm135_vm12 = vcmp.gt.f32.partialorder %v117_v30, 0.0 }
  0xe5   :  { %662 = vst [vmem:[#allocation8 + $0x10] sm:$0xff] %v594_v40   ;;  %v176_v44 = vmul.f32 %v160_v43, %v1007_v36  ;;  %774 = vrsqrt.f32 %v115_v45  ;;  %vm134_vm13 = vcmp.gt.f32.partialorder %v115_v45, 0.0 }
  0xe6   :  { %v765_v48 = vpop.eup %764 }
  0xe7   :  { %v767_v49 = vpop.eup %766  ;;  %v599_v29 = vpack.c.bf16 %v177_v42, %v176_v44  ;;  %v163_v52 = vsel %vm131_vm8, %v765_v48, 0.0  ;;  %v121_v55 = vpop.xlane.xlu1 %120 }
  0xe8   :  { %v179_v53 = vmul.f32 %v163_v52, %v983_v15  ;;  %v162_v54 = vsel %vm130_vm9, %v767_v49, 0.0  ;;  %776 = vrsqrt.f32 %v121_v55  ;;  %vm137_vm14 = vcmp.gt.f32.partialorder %v121_v55, 0.0 }
  0xe9   :  { %663 = vst [vmem:[#allocation8 + $0x18] sm:$0xff] %v599_v29   ;;  %v178_v37 = vmul.f32 %v162_v54, %v981_v14 }
  0xea   :  { %v119_v56 = vpop.xlane.xlu0 %118  ;;  %v769_v36 = vpop.eup %768 }
  0xeb   :  { %v771_v57 = vpop.eup %770  ;;  %v604_v60 = vpack.c.bf16 %v179_v53, %v178_v37  ;;  %v165_v61 = vsel %vm133_vm10, %v769_v36, 0.0  ;;  %778 = vrsqrt.f32 %v119_v56  ;;  %vm136_vm15 = vcmp.gt.f32.partialorder %v119_v56, 0.0 }
  0xec   :  { %v181_v62 = vmul.f32 %v165_v61, %v1021_v47  ;;  %v164_v63 = vsel %vm132_vm11, %v771_v57, 0.0 }
  0xed   :  { %664 = vst [vmem:[#allocation8 + $0x20] sm:$0xff] %v604_v60   ;;  %v180_v15 = vmul.f32 %v164_v63, %v1019_v46 }
  0xee   :  { %v773_v1 = vpop.eup %772 }
  0xef   :  { %v609_v0 = vpack.c.bf16 %v181_v62, %v180_v15  ;;  %v775_v14 = vpop.eup %774  ;;  %v167_v2 = vsel %vm135_vm12, %v773_v1, 0.0 }
  0xf0   :  { %v183_v3 = vmul.f32 %v167_v2, %v1029_v51  ;;  %v166_v4 = vsel %vm134_vm13, %v775_v14, 0.0 }
  0xf1   :  { %665 = vst [vmem:[#allocation8 + $0x28] sm:$0xff] %v609_v0   ;;  %v182_v5 = vmul.f32 %v166_v4, %v1027_v50 }
  0xf2   :  { %v777_v6 = vpop.eup %776 }
  0xf3   :  { %v614_v7 = vpack.c.bf16 %v183_v3, %v182_v5  ;;  %v169_v8 = vsel %vm137_vm14, %v777_v6, 0.0 }
  0xf4   :  { %v185_v46 = vmul.f32 %v169_v8, %v1045_v59 }
  0xf5   :  { %v779_v47 = vpop.eup %778  ;;  %666 = vst [vmem:[#allocation8 + $0x30] sm:$0xff] %v614_v7  }
  0xf6   :  { %v168_v9 = vsel %vm136_vm15, %v779_v47, 0.0 }
  0xf7   :  { %v184_v10 = vmul.f32 %v168_v9, %v1043_v58 }
  0xf9   :  { %v619_v13 = vpack.c.bf16 %v185_v46, %v184_v10 }
  0xfb   :  { %667 = vst [vmem:[#allocation8 + $0x38] sm:$0xff] %v619_v13  }
  0xfc   :  { %857 = shalt.err (!%p854_p0)
}
  0xfd   :  { %s858_s30 = scalar_lea.hbm %s1104_s3, 1024 }
  0xfe   :  { %p859_p1 = scmp.ne.s32.totalorder %s1104_s3, %s858_s30  ;;  %p862_p2 = scmp.lt.u32.totalorder %s858_s30, %s1104_s3 }
 0x100   :  { %p864_p3 = pnand %p862_p2, %p859_p1 }
 0x102   :  { %867 = shalt.err (!%p864_p3)
}
 0x103   :  { %s904_s9 = smov 64   ;;  %s905_s10 = smov 4   ;;  %v532_v51 = vld [vmem:[#allocation7] ss:$0 sm:$0xff] }
 0x104   :  { %493 = dma.vmem_to_hbm [thread:$0]  %s488_s26, 1024, %s1104_s3, [#allocation4], %s904_s9, %s904_s9, %s905_s10  }
 0x105   :  { %s906_s3 = smov [#allocation9]  }
 0x106   :  { %s499_s1 = sshll.u32 %s906_s3, 4  ;;  %s500_s1 = int_to_ptr.vmem [resolvable:$true] %s499_s1 }
 0x107   :  { %s868_s13 = scalar_lea.vmem %s500_s1, 1024  ;;  %p873_p5 = scmp.lt.s32.totalorder %s500_s1, %s500_s1 }
 0x108   :  { %p869_p4 = scmp.ne.s32.totalorder %s500_s1, %s868_s13  ;;  %p874_p6 = scmp.lt.s32.totalorder %s868_s13, %s868_s13 }
 0x10a   :  { %p875_p7 = por %p874_p6, %p873_p5 }
 0x10c   :  { %p876_p8 = pnand %p875_p7, %p869_p4 }
 0x12e   :  { %v709_v50 = vpop.f32.mrb[0].mxu0  ;;  %v717_v58 = vpop.f32.mrb[0].mxu1 }
 0x12f   :  { %v339_v59 = vpop.f32.mrb[1].mxu0  ;;  %v371_v17 = vpop.f32.mrb[1].mxu1  ;;  %v348_v20 = vadd.f32 %v709_v50, %v532_v51  ;;  %v380_v21 = vadd.f32 %v717_v58, %v532_v51 }
 0x130   :  { %v710_v18 = vpop.f32.mrb[2].mxu0  ;;  %v718_v19 = vpop.f32.mrb[2].mxu1  ;;  %v340_v27 = vadd.f32 %v532_v51, %v339_v59  ;;  %v372_v28 = vadd.f32 %v532_v51, %v371_v17 }
 0x131   :  { %v351_v22 = vadd.f32 %v710_v18, %v532_v51  ;;  %v383_v24 = vadd.f32 %v718_v19, %v532_v51  ;;  %v342_v25 = vpop.f32.mrb[3].mxu0  ;;  %v374_v26 = vpop.f32.mrb[3].mxu1 }
 0x132   :  { %v343_v31 = vadd.f32 %v532_v51, %v342_v25  ;;  %v375_v32 = vadd.f32 %v532_v51, %v374_v26 }
 0x133   :  { %v629_v33 = vpack.c.bf16 %v351_v22, %v348_v20  ;;  %v649_v16 = vpack.c.bf16 %v383_v24, %v380_v21 }
 0x134   :  { %v624_v34 = vpack.c.bf16 %v343_v31, %v340_v27  ;;  %v644_v35 = vpack.c.bf16 %v375_v32, %v372_v28 }
 0x135   :  { %668 = vst [vmem:[#allocation9 + $0x8] sm:$0xff] %v629_v33   ;;  %672 = vst [vmem:[#allocation9 + $0x28] sm:$0xff] %v649_v16  }
 0x136   :  { %625 = vst [vmem:[#allocation9] sm:$0xff] %v624_v34   ;;  %671 = vst [vmem:[#allocation9 + $0x20] sm:$0xff] %v644_v35   ;;  %v713_v11 = vpop.f32.mrb[4].mxu0  ;;  %v721_v38 = vpop.f32.mrb[4].mxu1 }
 0x137   :  { %v355_v23 = vpop.f32.mrb[5].mxu0  ;;  %v387_v12 = vpop.f32.mrb[5].mxu1  ;;  %v364_v41 = vadd.f32 %v713_v11, %v532_v51  ;;  %v396_v42 = vadd.f32 %v721_v38, %v532_v51 }
 0x138   :  { %v714_v39 = vpop.f32.mrb[6].mxu0  ;;  %v722_v40 = vpop.f32.mrb[6].mxu1  ;;  %v356_v48 = vadd.f32 %v532_v51, %v355_v23  ;;  %v388_v49 = vadd.f32 %v532_v51, %v387_v12 }
 0x139   :  { %v367_v43 = vadd.f32 %v714_v39, %v532_v51  ;;  %v399_v44 = vadd.f32 %v722_v40, %v532_v51  ;;  %v358_v30 = vpop.f32.mrb[7].mxu0  ;;  %v390_v45 = vpop.f32.mrb[7].mxu1 }
 0x13a   :  { %v359_v29 = vadd.f32 %v532_v51, %v358_v30  ;;  %v391_v52 = vadd.f32 %v532_v51, %v390_v45 }
 0x13b   :  { %v639_v53 = vpack.c.bf16 %v367_v43, %v364_v41  ;;  %v659_v54 = vpack.c.bf16 %v399_v44, %v396_v42 }
 0x13c   :  { %v634_v37 = vpack.c.bf16 %v359_v29, %v356_v48  ;;  %v654_v55 = vpack.c.bf16 %v391_v52, %v388_v49 }
 0x13d   :  { %670 = vst [vmem:[#allocation9 + $0x18] sm:$0xff] %v639_v53   ;;  %674 = vst [vmem:[#allocation9 + $0x38] sm:$0xff] %v659_v54  }
 0x13e   :  { %669 = vst [vmem:[#allocation9 + $0x10] sm:$0xff] %v634_v37   ;;  %673 = vst [vmem:[#allocation9 + $0x30] sm:$0xff] %v654_v55  }
 0x13f   :  { %879 = shalt.err (!%p876_p8)
}
 0x140   :  { %s880_s16 = scalar_lea.hbm %s1105_s4, 1024 }
 0x141   :  { %p881_p9 = scmp.ne.s32.totalorder %s1105_s4, %s880_s16  ;;  %p884_p10 = scmp.lt.u32.totalorder %s880_s16, %s1105_s4 }
 0x143   :  { %p886_p11 = pnand %p884_p10, %p881_p9 }
 0x145   :  { %889 = shalt.err (!%p886_p11)
}
 0x146   :  { %505 = dma.vmem_to_hbm [thread:$0]  %s500_s1, 1024, %s1105_s4, [#allocation10], %s904_s9, %s904_s9, %s905_s10  }
 0x147   :  { %894 = dma.done.wait [#allocation4], 1024  }
 0x148   :  { %895 = vsyncadd [#allocation4], 4294966272 }
 0x149   :  { %896 = dma.done.wait [#allocation10], 1024  }
 0x14a   :  { %897 = vsyncadd [#allocation10], 4294966272 }
 0x14b   :  { %512 = vsyncpa [#allocation3], 1 }
 0x14c   :  { %513 = vsyncpa [#allocation6], 1 }
 0x14d   :  { %514 = vsyncpa [#allocation4], 1 }
 0x14e   :  { %515 = vsyncpa [#allocation10], 1 }

</bundles_post_ra>
